<compile_context>
chip_gen: v5e
topology: v5e:2x2
jax: 0.10.0
libtpu: 0.0.40
codegen_flags: <defaults>
</compile_context>

<pallas_src>
import jax
import jax.numpy as jnp
from jax.experimental import pallas as pl
from jax.experimental.pallas import tpu as pltpu

K_IN = 100    # z dim
H_DIM = 128   # hidden dim
N_OUT = 784   # output dim (28*28)


def _round_up(x, m):
    return (x + m - 1) // m * m


def generator_kernel(z_ref, w1_ref, b1_ref, w2_ref, b2_ref, out_ref):
    # z_ref: (TB, 100) f32          w1_ref: (100, 128) bf16   b1_ref: (1, 128) f32
    # w2_ref: (128, 784) bf16       b2_ref: (1, 784) f32      out_ref: (TB, 784)
    z = z_ref[...].astype(jnp.bfloat16)                       # in-kernel cast (no wrapper pass)
    # Linear 1 (MXU, f32 accumulate) + bias
    h = jnp.dot(z, w1_ref[...], preferred_element_type=jnp.float32) + b1_ref[...]
    # LeakyReLU(0.2): slope in (0,1) so max(h, 0.2*h) is exact and cheap
    h = jnp.maximum(h, 0.2 * h)
    # Linear 2 (bf16 into MXU, f32 accumulate) + bias
    o = jnp.dot(h.astype(jnp.bfloat16), w2_ref[...],
                preferred_element_type=jnp.float32) + b2_ref[...]
    # Tanh (EUP) and store the true 784-wide tile
    out_ref[...] = jnp.tanh(o).astype(out_ref.dtype)


def _choose_tiling(batch, target_tile):
    """>=2 batch tiles when feasible (v7x has 2 TCs; also overlaps out-DMA),
    with tile rounded to 8 sublanes so padding waste is < 8 rows."""
    n_tiles = max(pl.cdiv(batch, target_tile), 2 if batch >= 16 else 1)
    tile_b = _round_up(pl.cdiv(batch, n_tiles), 8)
    return tile_b, n_tiles, tile_b * n_tiles


def generator_forward(z, w1, b1, w2, b2, *, target_tile=1024,
                      out_dtype=jnp.float32):
    """z: (B, 100) f32; w1: (100,128) bf16; b1: (1,128) f32;
    w2: (128,784) bf16; b2: (1,784) f32.  Returns (B, 784) out_dtype."""
    B, k = z.shape
    assert k == K_IN
    tile_b, grid_b, b_pad = _choose_tiling(B, target_tile)

    z_in = z if b_pad == B else jnp.pad(z, ((0, b_pad - B), (0, 0)))

    out_itemsize = jnp.dtype(out_dtype).itemsize
    flops = 2 * b_pad * (K_IN * H_DIM + H_DIM * N_OUT)
    bytes_accessed = (z_in.size * 4 + w1.size * 2 + b1.size * 4
                      + w2.size * 2 + b2.size * 4
                      + b_pad * N_OUT * out_itemsize)

    out = pl.pallas_call(
        generator_kernel,
        out_shape=jax.ShapeDtypeStruct((b_pad, N_OUT), out_dtype),
        grid_spec=pltpu.PrefetchScalarGridSpec(
            num_scalar_prefetch=0,
            grid=(grid_b,),
            in_specs=[
                # Activations: tiled over batch (last dim = full array dim).
                pl.BlockSpec((tile_b, K_IN), lambda i: (i, 0)),
                # Weights/biases: constant block index -> VMEM-resident.
                pl.BlockSpec((K_IN, H_DIM), lambda i: (0, 0)),
                pl.BlockSpec((1, H_DIM), lambda i: (0, 0)),
                pl.BlockSpec((H_DIM, N_OUT), lambda i: (0, 0)),
                pl.BlockSpec((1, N_OUT), lambda i: (0, 0)),
            ],
            out_specs=pl.BlockSpec((tile_b, N_OUT), lambda i: (i, 0)),
        ),
        compiler_params=pltpu.CompilerParams(
            # Independent batch tiles -> shard across v7x's 2 TensorCores.
            dimension_semantics=("parallel",),
            vmem_limit_bytes=64 * 1024 * 1024,
        ),
        cost_estimate=pl.CostEstimate(
            flops=flops,
            transcendentals=b_pad * N_OUT,
            bytes_accessed=bytes_accessed,
        ),
    )(z_in, w1, b1, w2, b2)

    return out if b_pad == B else out[:B]


def init_params(key):
    # Mirrors nn.Linear init shapes, stored transposed for row-major matmul:
    #   layer1: weight (128, 100), bias (128,)  -> w1 (100, 128), b1 (1, 128)
    #   layer2: weight (784, 128), bias (784,)  -> w2 (128, 784), b2 (1, 784)
    k1, k2, k3, k4 = jax.random.split(key, 4)
    lim1 = 1.0 / (K_IN ** 0.5)
    lim2 = 1.0 / (H_DIM ** 0.5)
    w1 = jax.random.uniform(k1, (K_IN, H_DIM), jnp.float32, -lim1, lim1)
    b1 = jax.random.uniform(k2, (1, H_DIM), jnp.float32, -lim1, lim1)
    w2 = jax.random.uniform(k3, (H_DIM, N_OUT), jnp.float32, -lim2, lim2)
    b2 = jax.random.uniform(k4, (1, N_OUT), jnp.float32, -lim2, lim2)
    kernel_params = (w1.astype(jnp.bfloat16), b1, w2.astype(jnp.bfloat16), b2)
    return kernel_params, (w1, b1, w2, b2)


def reference_forward_mixed(z, w1_bf, b1, w2_bf, b2):
    """Pure-JAX reference mirroring the kernel's bf16 rounding (f32 accumulate)."""
    zb = z.astype(jnp.bfloat16).astype(jnp.float32)
    h = zb @ w1_bf.astype(jnp.float32) + b1
    h = jnp.maximum(h, 0.2 * h)
    h = h.astype(jnp.bfloat16).astype(jnp.float32)
    return jnp.tanh(h @ w2_bf.astype(jnp.float32) + b2)


def reference_forward_f32(z, w1, b1, w2, b2):
    """Full-f32 PyTorch-semantics reference (no bf16)."""
    h = z @ w1 + b1
    h = jnp.maximum(h, 0.2 * h)
    return jnp.tanh(h @ w2 + b2)


if __name__ == "__main__":
    key = jax.random.PRNGKey(0)
    kz, kp = jax.random.split(key)

    B = 16  # small batch; target_tile=8 forces a 2-step grid to exercise tiling
    z = jax.random.normal(kz, (B, K_IN), jnp.float32)
    (w1_b, b1, w2_b, b2), (w1_f, b1_f, w2_f, b2_f) = init_params(kp)

    out = generator_forward(z, w1_b, b1, w2_b, b2, target_tile=8)
    out = jax.block_until_ready(out)
    assert out.shape == (B, N_OUT)
    assert out.dtype == jnp.float32

    # Faithful check against the mixed-precision (bf16-in / f32-acc) reference
    # that mirrors the kernel exactly.
    ref_mixed = reference_forward_mixed(z, w1_b, b1, w2_b, b2)
    assert jnp.allclose(out, ref_mixed, atol=1e-3, rtol=1e-3)

    # Loose semantic check against the pure-f32 PyTorch-equivalent forward
    # (bf16 weight/activation rounding accounts for the small deviation).
    ref_f32 = reference_forward_f32(z, w1_f, b1_f, w2_f, b2_f)
    assert jnp.allclose(out, ref_f32, atol=5e-2)

    print("KERNEL_OK")
</pallas_src>

<mosaic_0001>
module attributes {stable_mosaic.version = 11 : i64} {
  func.func @generator_kernel(%arg0: i32, %arg1: memref<8x100xf32, #tpu.memory_space<vmem>>, %arg2: memref<100x128xbf16, #tpu.memory_space<vmem>>, %arg3: memref<1x128xf32, #tpu.memory_space<vmem>>, %arg4: memref<128x784xbf16, #tpu.memory_space<vmem>>, %arg5: memref<1x784xf32, #tpu.memory_space<vmem>>, %arg6: memref<8x784xf32, #tpu.memory_space<vmem>>) attributes {dimension_semantics = [#tpu.dimension_semantics<parallel>], iteration_bounds = array<i64: 2>, scalar_prefetch = 0 : i64, scratch_operands = 0 : i64, tpu.core_type = #tpu.core_type<tc>, window_params = [{transform_indices = @transform_0, window_bounds = array<i64: 8, 100>}, {pipeline_mode = #tpu.pipeline_mode<synchronous>, transform_indices = @transform_1, window_bounds = array<i64: 100, 128>}, {pipeline_mode = #tpu.pipeline_mode<synchronous>, transform_indices = @transform_2, window_bounds = array<i64: 1, 128>}, {pipeline_mode = #tpu.pipeline_mode<synchronous>, transform_indices = @transform_3, window_bounds = array<i64: 128, 784>}, {pipeline_mode = #tpu.pipeline_mode<synchronous>, transform_indices = @transform_4, window_bounds = array<i64: 1, 784>}, {transform_indices = @transform_5, window_bounds = array<i64: 8, 784>}]} {
    %c0 = arith.constant 0 : index
    %c0_0 = arith.constant 0 : index
    %0 = vector.load %arg1[%c0, %c0_0] : memref<8x100xf32, #tpu.memory_space<vmem>>, vector<8x100xf32>
    %1 = arith.truncf %0 : vector<8x100xf32> to vector<8x100xbf16>
    %c0_1 = arith.constant 0 : index
    %c0_2 = arith.constant 0 : index
    %2 = vector.load %arg2[%c0_1, %c0_2] : memref<100x128xbf16, #tpu.memory_space<vmem>>, vector<100x128xbf16>
    %cst = arith.constant dense<0.000000e+00> : vector<8x128xf32>
    %3 = tpu.matmul %1, %2, %cst {dimension_numbers = #tpu.dot_dimension_numbers<[1], [0], [0], [1], [0, 0, 1, 1], [], []>} : vector<8x100xbf16>, vector<100x128xbf16>, vector<8x128xf32> -> vector<8x128xf32>
    %c0_3 = arith.constant 0 : index
    %c0_4 = arith.constant 0 : index
    %4 = vector.load %arg3[%c0_3, %c0_4] : memref<1x128xf32, #tpu.memory_space<vmem>>, vector<1x128xf32>
    %5 = vector.broadcast %4 : vector<1x128xf32> to vector<8x128xf32>
    %6 = arith.addf %3, %5 : vector<8x128xf32>
    %cst_5 = arith.constant 2.000000e-01 : f32
    %7 = vector.broadcast %cst_5 : f32 to vector<8x128xf32>
    %8 = arith.mulf %7, %6 : vector<8x128xf32>
    %9 = arith.maximumf %6, %8 : vector<8x128xf32>
    %10 = arith.truncf %9 : vector<8x128xf32> to vector<8x128xbf16>
    %c0_6 = arith.constant 0 : index
    %c0_7 = arith.constant 0 : index
    %11 = vector.load %arg4[%c0_6, %c0_7] : memref<128x784xbf16, #tpu.memory_space<vmem>>, vector<128x784xbf16>
    %cst_8 = arith.constant dense<0.000000e+00> : vector<8x784xf32>
    %12 = tpu.matmul %10, %11, %cst_8 {dimension_numbers = #tpu.dot_dimension_numbers<[1], [0], [0], [1], [0, 0, 1, 1], [], []>} : vector<8x128xbf16>, vector<128x784xbf16>, vector<8x784xf32> -> vector<8x784xf32>
    %c0_9 = arith.constant 0 : index
    %c0_10 = arith.constant 0 : index
    %13 = vector.load %arg5[%c0_9, %c0_10] : memref<1x784xf32, #tpu.memory_space<vmem>>, vector<1x784xf32>
    %14 = vector.broadcast %13 : vector<1x784xf32> to vector<8x784xf32>
    %15 = arith.addf %12, %14 : vector<8x784xf32>
    %16 = math.tanh %15 : vector<8x784xf32>
    %c0_11 = arith.constant 0 : index
    %c0_12 = arith.constant 0 : index
    %17 = vector.load %arg6[%c0_11, %c0_12] : memref<8x784xf32, #tpu.memory_space<vmem>>, vector<8x784xf32>
    tpu.vector_store %arg6[%c0_11, %c0_12], %16 {strides = array<i32>} : memref<8x784xf32, #tpu.memory_space<vmem>>, vector<8x784xf32>,
    return
  }
  func.func @transform_0(%arg0: i32) -> (i32, i32) {
    %c0_i32 = arith.constant 0 : i32
    %c0_i32_0 = arith.constant 0 : i32
    return %arg0, %c0_i32 : i32, i32
  }
  func.func @transform_1(%arg0: i32) -> (i32, i32) {
    %c0_i32 = arith.constant 0 : i32
    %c0_i32_0 = arith.constant 0 : i32
    %c0_i32_1 = arith.constant 0 : i32
    return %c0_i32, %c0_i32_0 : i32, i32
  }
  func.func @transform_2(%arg0: i32) -> (i32, i32) {
    %c0_i32 = arith.constant 0 : i32
    %c0_i32_0 = arith.constant 0 : i32
    %c0_i32_1 = arith.constant 0 : i32
    return %c0_i32, %c0_i32_0 : i32, i32
  }
  func.func @transform_3(%arg0: i32) -> (i32, i32) {
    %c0_i32 = arith.constant 0 : i32
    %c0_i32_0 = arith.constant 0 : i32
    %c0_i32_1 = arith.constant 0 : i32
    return %c0_i32, %c0_i32_0 : i32, i32
  }
  func.func @transform_4(%arg0: i32) -> (i32, i32) {
    %c0_i32 = arith.constant 0 : i32
    %c0_i32_0 = arith.constant 0 : i32
    %c0_i32_1 = arith.constant 0 : i32
    return %c0_i32, %c0_i32_0 : i32, i32
  }
  func.func @transform_5(%arg0: i32) -> (i32, i32) {
    %c0_i32 = arith.constant 0 : i32
    %c0_i32_0 = arith.constant 0 : i32
    return %arg0, %c0_i32 : i32, i32
  }
}

</mosaic_0001>

<bundles_post_ra>
// kernel: tpu_custom_call.1
= control target key start
LH: loop header
LB: loop body
LE: loop exit
PB: predicated region body
PF: predicated region fallthrough
CT: control target
= control target key end

     0   :  { %10 = vsyncpa [#allocation3], 0  ;;  %s1786_s0 = inlined_call_operand.vmem [shape: f32[16,100], index: 0, kind: input, shape index: {}]   ;;  %s1787_s1 = inlined_call_operand.vmem [shape: bf16[100,128], index: 1, kind: input, shape index: {}]   ;;  %s1788_s2 = inlined_call_operand.vmem [shape: f32[1,128], index: 2, kind: input, shape index: {}]   ;;  %s1789_s3 = inlined_call_operand.vmem [shape: bf16[128,784], index: 3, kind: input, shape index: {}]   ;;  %s1790_s4 = inlined_call_operand.vmem [shape: f32[1,784], index: 4, kind: input, shape index: {}]   ;;  %s1791_s5 = inlined_call_operand.hbm [shape: f32[16,784], index: 5, kind: output, shape index: {}]  }
   0x1   :  { %12 = vsyncpa [#allocation3 + $0x1], 0  ;;  %s1322_s18 = smov 0   ;;  %s1324_s19 = smov 0  }
   0x2   :  { %s1326_s20 = smov 0   ;;  %s1328_s21 = smov 0  }
   0x3 LB: > { %s1343_s22 = sadd.s32 4294967295, %s1290_s21   ;;  %s853_s23 = sadd.s32 4294967294, %s1290_s21   ;;  %s1290_s21 = sphi %s1328_s21, %s1797_s21   ;;  %s1286_s20 = sphi %s1326_s20, %s1796_s20   ;;  %s1282_s19 = sphi %s1324_s19, %s1795_s19   ;;  %s1278_s18 = sphi %s1322_s18, %s1794_s18  }
   0x4   : > { %s1347_s24 = sadd.s32 1, %s1290_s21   ;;  %s135_s25 = sadd.s32 1, %s1286_s20 }
   0x5   : > { %s132_s26 = ssub.s32 %s1290_s21, %s1347_s24  ;;  %p145_p0 = scmp.ne.s32.totalorder %s1286_s20, %s1282_s19 }
   0x6   : > { %p133_p1 = scmp.eq.s32.totalorder %s132_s26, 0  ;;  %p146_p2 = scmp.eq.s32.totalorder %s1343_s22, 1 }
   0x7   : > { %p151_p3 = scmp.ne.s32.totalorder %s1282_s19, %s1278_s18  ;;  %p152_p4 = scmp.eq.s32.totalorder %s853_s23, 1 }
   0x8   : > { %s1358_s27 = scalar_select %p133_p1, %s1286_s20, %s135_s25  }
   0x9   : > { %p1360_p5 = por %p146_p2, %p145_p0  ;;  %p1364_p6 = por %p152_p4, %p151_p3 }
   0xa   : > { %p856_p7 = scmp.ge.s32.totalorder %s1290_s21, 1  ;;  %p189_p8 = scmp.lt.s32.totalorder %s1290_s21, 3 }
   0xc   : > { %p190_p9 = pnand %p856_p7, %p189_p8 }
   0xd   : > { %p216_p10 = scmp.lt.s32.totalorder (!%p190_p9), %s1343_s22, 1  ;;  %s213_s12 = sand.u32 (!%p190_p9), 1, %s1282_s19  }
   0xe   : > { %193 = sbr.rel (%p190_p9) target bundleno = 347 (0x15b), region = 40 }
   0xf   : > { %s1172_s14 = smul.u32 (!%p190_p9), 56, %s213_s12 }
  0x10   : > { %s1173_s23 = smul.u32 (!%p190_p9), 56, %s1343_s22 }
  0x11   : > { %s1743_s15 = scalar_lea.vmem (!%p190_p9), [#allocation2], %s1172_s14 }
  0x12   : > { %s789_s30 = scalar_lea.hbm (!%p190_p9), %s1791_s5, %s1173_s23  ;;  %s791_s6 = sshll.u32 (!%p190_p9), %s1743_s15, 4  ;;  %s792_s6 = int_to_ptr.vmem [resolvable:$true] %s791_s6 }
  0x13   : > { %v235_v0 = vld [vmem:[%s1787_s1 + $0x30] sm:$0x3]  ;;  %vm283_vm0 = vcmask 1041408   ;;  %v1081_v2 = vld [vmem:[%s1789_s3 + $0x188] sm:$0xf]  ;;  %v1114_v30 = vld [vmem:[%s1787_s1 + $0x20] sm:$0xff] }
  0x14   : > { %v265_v1 = vunpack.c.l.b16 %v235_v0  ;;  %v1168_v3 = vld [vmem:[%s1789_s3 + $0x1a0] sm:$0xf0]  ;;  %v1165_v6 = vld [vmem:[%s1789_s3 + $0x18c] sm:$0xf]  ;;  %v1083_v7 = vld [vmem:[%s1789_s3 + $0x1a4] sm:$0xf0] }
  0x15   : > { %v1082_v5 = vor.u32 %v1168_v3, %v1081_v2  ;;  %v1089_v8 = vld [vmem:[%s1789_s3 + $0x190] sm:$0xf]  ;;  %v1086_v9 = vor.u32 %v1165_v6, %v1083_v7  ;;  %v1169_v10 = vld [vmem:[%s1789_s3 + $0x1a8] sm:$0xf0]  ;;  %v1158_v15 = vld [vmem:[%s1789_s3 + $0x154] sm:$0xf] }
  0x16   : > { %v272_v4 = vpack.c.b16 %v265_v1, %v265_v1  ;;  %v1053_v11 = vld [vmem:[%s1789_s3 + $0x150] sm:$0xf]  ;;  %v1090_v13 = vor.u32 %v1169_v10, %v1089_v8  ;;  %v1161_v14 = vld [vmem:[%s1789_s3 + $0x168] sm:$0xf0]  ;;  %v1061_v19 = vld [vmem:[%s1789_s3 + $0x158] sm:$0xf] }
  0x17   : > { %671 = vmatpush.bf16.msra.mxu1 %v1082_v5  ;;  %v1115_v16 = vld [vmem:[%s1787_s1 + $0x28] sm:$0xff]  ;;  %684 = vmatpush.bf16.msra.mxu2 %v1086_v9  ;;  %v1054_v17 = vor.u32 %v1161_v14, %v1053_v11  ;;  %v1055_v18 = vld [vmem:[%s1789_s3 + $0x16c] sm:$0xf0]  ;;  %v1162_v21 = vld [vmem:[%s1789_s3 + $0x170] sm:$0xf0]  ;;  %s217_s17 = scalar_select %p216_p10, %s1343_s22, 1 }
  0x18   : > { %v285_v12 = vsel %vm283_vm0, %v272_v4, 0  ;;  %697 = vmatpush.bf16.msra.mxu3 %v1090_v13  ;;  %v1058_v20 = vor.u32 %v1158_v15, %v1055_v18  ;;  %v1025_v22 = vld [vmem:[%s1789_s3 + $0x118] sm:$0xf]  ;;  %v1154_v23 = vld [vmem:[%s1789_s3 + $0x130] sm:$0xf0]  ;;  %v1062_v24 = vor.u32 %v1162_v21, %v1061_v19  ;;  %v1111_v60 = vld [vmem:[%s1787_s1 + $0x8] sm:$0xff] }
  0x19   : > { %288 = vmatpush.bf16.msra.mxu0 %v285_v12  ;;  %v1151_v25 = vld [vmem:[%s1789_s3 + $0x11c] sm:$0xf]  ;;  %v1027_v26 = vld [vmem:[%s1789_s3 + $0x134] sm:$0xf0]  ;;  %v1033_v27 = vld [vmem:[%s1789_s3 + $0x120] sm:$0xf]  ;;  %v1026_v28 = vor.u32 %v1154_v23, %v1025_v22 }
  0x1a   : > { %v1155_v29 = vld [vmem:[%s1789_s3 + $0x138] sm:$0xf0]  ;;  %v1030_v31 = vor.u32 %v1151_v25, %v1027_v26  ;;  %v997_v32 = vld [vmem:[%s1789_s3 + $0xe0] sm:$0xf]  ;;  %v1144_v35 = vld [vmem:[%s1789_s3 + $0xe4] sm:$0xf] }
  0x1b   : > { %672 = vmatpush.bf16.msra.mxu1 %v1054_v17  ;;  %685 = vmatpush.bf16.msra.mxu2 %v1058_v20  ;;  %v1147_v33 = vld [vmem:[%s1789_s3 + $0xf8] sm:$0xf0]  ;;  %v1034_v34 = vor.u32 %v1155_v29, %v1033_v27  ;;  %v999_v36 = vld [vmem:[%s1789_s3 + $0xfc] sm:$0xf0]  ;;  %v1005_v37 = vld [vmem:[%s1789_s3 + $0xe8] sm:$0xf] }
  0x1c   : > { %698 = vmatpush.bf16.msra.mxu3 %v1062_v24  ;;  %v1148_v38 = vld [vmem:[%s1789_s3 + $0x100] sm:$0xf0]  ;;  %v998_v39 = vor.u32 %v1147_v33, %v997_v32  ;;  %v1113_v40 = vld [vmem:[%s1787_s1 + $0x18] sm:$0xff]  ;;  %v1002_v41 = vor.u32 %v1144_v35, %v999_v36  ;;  %v969_v42 = vld [vmem:[%s1789_s3 + $0xa8] sm:$0xf]  ;;  %s857_s16 = sshll.u32 %s217_s17, 3 }
  0x1d   : > { %289 = vmatpush.bf16.msra.mxu0 %v1115_v16  ;;  %v1140_v43 = vld [vmem:[%s1789_s3 + $0xc0] sm:$0xf0]  ;;  %v1006_v44 = vor.u32 %v1148_v38, %v1005_v37  ;;  %v1137_v45 = vld [vmem:[%s1789_s3 + $0xac] sm:$0xf]  ;;  %v971_v46 = vld [vmem:[%s1789_s3 + $0xc4] sm:$0xf0]  ;;  %s219_s13 = scalar_lea.vmem %s1786_s0, %s857_s16 }
  0x1e   : > { %v977_v47 = vld [vmem:[%s1789_s3 + $0xb0] sm:$0xf]  ;;  %v1141_v48 = vld [vmem:[%s1789_s3 + $0xc8] sm:$0xf0]  ;;  %v970_v49 = vor.u32 %v1140_v43, %v969_v42  ;;  %v974_v51 = vor.u32 %v1137_v45, %v971_v46  ;;  %v1130_v55 = vld [vmem:[%s1789_s3 + $0x74] sm:$0xf] }
  0x1f   : > { %673 = vmatpush.bf16.msra.mxu1 %v1026_v28  ;;  %686 = vmatpush.bf16.msra.mxu2 %v1030_v31  ;;  %v1112_v50 = vld [vmem:[%s1787_s1 + $0x10] sm:$0xff]  ;;  %v1133_v53 = vld [vmem:[%s1789_s3 + $0x88] sm:$0xf0]  ;;  %v978_v54 = vor.u32 %v1141_v48, %v977_v47  ;;  %v949_v57 = vld [vmem:[%s1789_s3 + $0x78] sm:$0xf]  ;;  %vm279_vm1 = vcmask 818176  }
  0x20   : > { %699 = vmatpush.bf16.msra.mxu3 %v1034_v34  ;;  %v941_v52 = vld [vmem:[%s1789_s3 + $0x70] sm:$0xf]  ;;  %v1134_v58 = vld [vmem:[%s1789_s3 + $0x90] sm:$0xf0]  ;;  %v913_v62 = vld [vmem:[%s1789_s3 + $0x38] sm:$0xf] }
  0x21   : > { %290 = vmatpush.bf16.msra.mxu0 %v1114_v30  ;;  %v943_v56 = vld [vmem:[%s1789_s3 + $0x8c] sm:$0xf0]  ;;  %v942_v59 = vor.u32 %v1133_v53, %v941_v52  ;;  %v1126_v63 = vld [vmem:[%s1789_s3 + $0x50] sm:$0xf0]  ;;  %v950_v1 = vor.u32 %v1134_v58, %v949_v57  ;;  %v1123_v2 = vld [vmem:[%s1789_s3 + $0x3c] sm:$0xf] }
  0x22   : > { %v946_v61 = vor.u32 %v1130_v55, %v943_v56  ;;  %v1166_v0 = vld [vmem:[%s1789_s3 + $0x194] sm:$0xf]  ;;  %v915_v3 = vld [vmem:[%s1789_s3 + $0x54] sm:$0xf0]  ;;  %v1091_v4 = vld [vmem:[%s1789_s3 + $0x1ac] sm:$0xf0]  ;;  %v914_v9 = vor.u32 %v1126_v63, %v913_v62 }
  0x23   : > { %674 = vmatpush.bf16.msra.mxu1 %v998_v39  ;;  %687 = vmatpush.bf16.msra.mxu2 %v1002_v41  ;;  %v921_v5 = vld [vmem:[%s1789_s3 + $0x40] sm:$0xf]  ;;  %v1127_v6 = vld [vmem:[%s1789_s3 + $0x58] sm:$0xf0]  ;;  %v1063_v12 = vld [vmem:[%s1789_s3 + $0x174] sm:$0xf0]  ;;  %v918_v13 = vor.u32 %v1123_v2, %v915_v3  ;;  %v1094_v17 = vor.u32 %v1166_v0, %v1091_v4 }
  0x24   : > { %700 = vmatpush.bf16.msra.mxu3 %v1006_v44  ;;  %v1110_v7 = vld [vmem:[%s1787_s1] sm:$0xff]  ;;  %v1159_v11 = vld [vmem:[%s1789_s3 + $0x15c] sm:$0xf]  ;;  %v922_v18 = vor.u32 %v1127_v6, %v921_v5  ;;  %v1097_v19 = vld [vmem:[%s1789_s3 + $0x198] sm:$0xf]  ;;  %s793_s7 = sshll.u32 %s789_s30, 4  ;;  %s794_s7 = int_to_ptr.hbm [resolvable:$true] %s793_s7 }
  0x25   : > { %291 = vmatpush.bf16.msra.mxu0 %v1113_v40  ;;  %v221_v8 = vld [vmem:[%s219_s13] sm:$0xff]  ;;  %v1119_v14 = vld [vmem:[%s1789_s3 + $0x18] sm:$0xf0]  ;;  %v1170_v20 = vld [vmem:[%s1789_s3 + $0x1b0] sm:$0xf0]  ;;  %v1066_v31 = vor.u32 %v1159_v11, %v1063_v12  ;;  %vm775_vm2 = vcmask 130048  }
  0x26   : > { %v885_v10 = vld [vmem:[%s1789_s3] sm:$0xf]  ;;  %v1116_v15 = vld [vmem:[%s1789_s3 + $0x4] sm:$0xf]  ;;  %v893_v21 = vld [vmem:[%s1789_s3 + $0x8] sm:$0xf]  ;;  %v222_v24 = vpack.c.bf16 %v221_v8, %v221_v8  ;;  %v1098_v30 = vor.u32 %v1170_v20, %v1097_v19 }
  0x27   : > { %675 = vmatpush.bf16.msra.mxu1 %v970_v49  ;;  %688 = vmatpush.bf16.msra.mxu2 %v974_v51  ;;  %v887_v16 = vld [vmem:[%s1789_s3 + $0x1c] sm:$0xf0]  ;;  %v1120_v22 = vld [vmem:[%s1789_s3 + $0x20] sm:$0xf0]  ;;  %v1167_v23 = vld [vmem:[%s1789_s3 + $0x19c] sm:$0xf]  ;;  %v886_v25 = vor.u32 %v1119_v14, %v885_v10 }
  0x28   : > { %701 = vmatpush.bf16.msra.mxu3 %v978_v54  ;;  %v1099_v26 = vld [vmem:[%s1789_s3 + $0x1b4] sm:$0xf0]  ;;  %v1105_v27 = vld [vmem:[%s1789_s3 + $0x1a0] sm:$0xf]  ;;  %v1171_v28 = vld [vmem:[%s1789_s3 + $0x1b8] sm:$0xf0]  ;;  %v890_v29 = vor.u32 %v1116_v15, %v887_v16  ;;  %v894_v32 = vor.u32 %v1120_v22, %v893_v21 }
  0x29   : > { %292 = vmatpush.bf16.msra.mxu0 %v1112_v50  ;;  %v1069_v33 = vld [vmem:[%s1789_s3 + $0x160] sm:$0xf]  ;;  %v1163_v34 = vld [vmem:[%s1789_s3 + $0x178] sm:$0xf0]  ;;  %v1152_v35 = vld [vmem:[%s1789_s3 + $0x124] sm:$0xf]  ;;  %v1102_v37 = vor.u32 %v1167_v23, %v1099_v26  ;;  %v1106_v38 = vor.u32 %v1171_v28, %v1105_v27 }
  0x2a   : > { %v1035_v36 = vld [vmem:[%s1789_s3 + $0x13c] sm:$0xf0]  ;;  %v1160_v39 = vld [vmem:[%s1789_s3 + $0x164] sm:$0xf]  ;;  %v1077_v41 = vld [vmem:[%s1789_s3 + $0x168] sm:$0xf]  ;;  %v1070_v43 = vor.u32 %v1163_v34, %v1069_v33 }
  0x2b   : > { %676 = vmatpush.bf16.msra.mxu1 %v942_v59  ;;  %689 = vmatpush.bf16.msra.mxu2 %v946_v61  ;;  %v1071_v40 = vld [vmem:[%s1789_s3 + $0x17c] sm:$0xf0]  ;;  %v1164_v42 = vld [vmem:[%s1789_s3 + $0x180] sm:$0xf0]  ;;  %v1038_v44 = vor.u32 %v1152_v35, %v1035_v36  ;;  %v1145_v45 = vld [vmem:[%s1789_s3 + $0xec] sm:$0xf] }
  0x2c   : > { %702 = vmatpush.bf16.msra.mxu3 %v950_v1  ;;  %v1007_v46 = vld [vmem:[%s1789_s3 + $0x104] sm:$0xf0]  ;;  %v1074_v47 = vor.u32 %v1160_v39, %v1071_v40  ;;  %v1078_v48 = vor.u32 %v1164_v42, %v1077_v41  ;;  %v1138_v50 = vld [vmem:[%s1789_s3 + $0xb4] sm:$0xf]  ;;  %v979_v51 = vld [vmem:[%s1789_s3 + $0xcc] sm:$0xf0] }
  0x2d   : > { %293 = vmatpush.bf16.msra.mxu0 %v1111_v60  ;;  %v1010_v49 = vor.u32 %v1145_v45, %v1007_v46  ;;  %v982_v52 = vor.u32 %v1138_v50, %v979_v51  ;;  %v1131_v53 = vld [vmem:[%s1789_s3 + $0x7c] sm:$0xf]  ;;  %v951_v54 = vld [vmem:[%s1789_s3 + $0x94] sm:$0xf0]  ;;  %v1124_v56 = vld [vmem:[%s1789_s3 + $0x44] sm:$0xf] }
  0x2e   : > { %v954_v55 = vor.u32 %v1131_v53, %v951_v54  ;;  %v923_v57 = vld [vmem:[%s1789_s3 + $0x5c] sm:$0xf0]  ;;  %v1041_v58 = vld [vmem:[%s1789_s3 + $0x128] sm:$0xf]  ;;  %v1156_v60 = vld [vmem:[%s1789_s3 + $0x140] sm:$0xf0] }
  0x2f   : > { %677 = vmatpush.bf16.msra.mxu1 %v914_v9  ;;  %690 = vmatpush.bf16.msra.mxu2 %v918_v13  ;;  %v926_v59 = vor.u32 %v1124_v56, %v923_v57  ;;  %v1153_v61 = vld [vmem:[%s1789_s3 + $0x12c] sm:$0xf]  ;;  %v1043_v62 = vld [vmem:[%s1789_s3 + $0x144] sm:$0xf0]  ;;  %v1042_v63 = vor.u32 %v1156_v60, %v1041_v58  ;;  %v1049_v1 = vld [vmem:[%s1789_s3 + $0x130] sm:$0xf] }
  0x30   : > { %703 = vmatpush.bf16.msra.mxu3 %v922_v18  ;;  %v1046_v0 = vor.u32 %v1153_v61, %v1043_v62  ;;  %v1157_v2 = vld [vmem:[%s1789_s3 + $0x148] sm:$0xf0]  ;;  %v895_v5 = vld [vmem:[%s1789_s3 + $0x24] sm:$0xf0]  ;;  %v1013_v6 = vld [vmem:[%s1789_s3 + $0xf0] sm:$0xf] }
  0x31   : > { %294 = vmatpush.bf16.msra.mxu0 %v1110_v7  ;;  %v1050_v3 = vor.u32 %v1157_v2, %v1049_v1  ;;  %v1117_v4 = vld [vmem:[%s1789_s3 + $0xc] sm:$0xf]  ;;  %v1146_v9 = vld [vmem:[%s1789_s3 + $0xf4] sm:$0xf]  ;;  %v1015_v10 = vld [vmem:[%s1789_s3 + $0x10c] sm:$0xf0] }
  0x32   : > { %v898_v7 = vor.u32 %v1117_v4, %v895_v5  ;;  %v1149_v8 = vld [vmem:[%s1789_s3 + $0x108] sm:$0xf0]  ;;  %v1018_v12 = vor.u32 %v1146_v9, %v1015_v10  ;;  %v1021_v13 = vld [vmem:[%s1789_s3 + $0xf8] sm:$0xf]  ;;  %v1150_v14 = vld [vmem:[%s1789_s3 + $0x110] sm:$0xf0] }
  0x33   : > { %678 = vmatpush.bf16.msra.mxu1 %v886_v25  ;;  %691 = vmatpush.bf16.msra.mxu2 %v890_v29  ;;  %v1014_v11 = vor.u32 %v1149_v8, %v1013_v6  ;;  %v1022_v15 = vor.u32 %v1150_v14, %v1021_v13  ;;  %v985_v16 = vld [vmem:[%s1789_s3 + $0xb8] sm:$0xf]  ;;  %v1139_v18 = vld [vmem:[%s1789_s3 + $0xbc] sm:$0xf]  ;;  %v993_v21 = vld [vmem:[%s1789_s3 + $0xc0] sm:$0xf] }
  0x34   : > { %882 = vmatmul.msk.bf16.vlgmr.msra.gmra.mxu0 %vm279_vm1, %v222_v24  ;;  %704 = vmatpush.bf16.msra.mxu3 %v894_v32  ;;  %v987_v20 = vld [vmem:[%s1789_s3 + $0xd4] sm:$0xf0]  ;;  %v1143_v22 = vld [vmem:[%s1789_s3 + $0xd8] sm:$0xf0]  ;;  %v957_v25 = vld [vmem:[%s1789_s3 + $0x80] sm:$0xf] }
  0x35   : > { %710 = vmatpush.bf16.msrb.mxu0 %v1094_v17  ;;  %v1142_v17 = vld [vmem:[%s1789_s3 + $0xd0] sm:$0xf0]  ;;  %v990_v23 = vor.u32 %v1139_v18, %v987_v20  ;;  %v994_v24 = vor.u32 %v1143_v22, %v993_v21  ;;  %v1135_v26 = vld [vmem:[%s1789_s3 + $0x98] sm:$0xf0]  ;;  %v1132_v27 = vld [vmem:[%s1789_s3 + $0x84] sm:$0xf] }
  0x36   : > { %v986_v19 = vor.u32 %v1142_v17, %v985_v16  ;;  %v958_v28 = vor.u32 %v1135_v26, %v957_v25  ;;  %v959_v29 = vld [vmem:[%s1789_s3 + $0x9c] sm:$0xf0]  ;;  %v929_v34 = vld [vmem:[%s1789_s3 + $0x48] sm:$0xf]  ;;  %v1128_v35 = vld [vmem:[%s1789_s3 + $0x60] sm:$0xf0] }
  0x37   : > { %723 = vmatpush.bf16.msrb.mxu1 %v1098_v30  ;;  %736 = vmatpush.bf16.msrb.mxu2 %v1102_v37  ;;  %v965_v30 = vld [vmem:[%s1789_s3 + $0x88] sm:$0xf]  ;;  %v962_v32 = vor.u32 %v1132_v27, %v959_v29  ;;  %v1125_v36 = vld [vmem:[%s1789_s3 + $0x4c] sm:$0xf]  ;;  %v930_v40 = vor.u32 %v1128_v35, %v929_v34  ;;  %v1118_v45 = vld [vmem:[%s1789_s3 + $0x14] sm:$0xf] }
  0x38   : > { %749 = vmatpush.bf16.msrb.mxu3 %v1106_v38  ;;  %v931_v37 = vld [vmem:[%s1789_s3 + $0x64] sm:$0xf0]  ;;  %v937_v38 = vld [vmem:[%s1789_s3 + $0x50] sm:$0xf]  ;;  %v1129_v39 = vld [vmem:[%s1789_s3 + $0x68] sm:$0xf0] }
  0x39   : > { %711 = vmatpush.bf16.msrb.mxu0 %v1066_v31  ;;  %v1136_v31 = vld [vmem:[%s1789_s3 + $0xa0] sm:$0xf0]  ;;  %v934_v41 = vor.u32 %v1125_v36, %v931_v37  ;;  %v938_v42 = vor.u32 %v1129_v39, %v937_v38  ;;  %v903_v46 = vld [vmem:[%s1789_s3 + $0x2c] sm:$0xf0]  ;;  %s778_s22 = scalar_lea.sflag [#allocation3], %s213_s12  ;;  %s1242_s16 = sshra.s32 %s794_s7, 4  ;;  %s1243_s16 = int_to_ptr.hbm [resolvable:$true] %s1242_s16 }
  0x3a   : > { %v966_v33 = vor.u32 %v1136_v31, %v965_v30  ;;  %v906_v50 = vor.u32 %v1118_v45, %v903_v46  ;;  %s1244_s8 = scalar_lea.hbm %s1243_s16, 56  ;;  %s1248_s17 = scalar_lea.hbm %s1791_s5, 112 }
  0x3b   : > { %724 = vmatpush.bf16.msrb.mxu1 %v1070_v43  ;;  %737 = vmatpush.bf16.msrb.mxu2 %v1074_v47  ;;  %v901_v43 = vld [vmem:[%s1789_s3 + $0x10] sm:$0xf]  ;;  %v909_v47 = vld [vmem:[%s1789_s3 + $0x18] sm:$0xf]  ;;  %p1245_p11 = scmp.ne.s32.totalorder %s1243_s16, %s1244_s8  ;;  %p1249_p0 = scmp.lt.s32.totalorder %s1243_s16, %s1791_s5 }
  0x3c   : > { %750 = vmatpush.bf16.msrb.mxu3 %v1078_v48  ;;  %v1122_v48 = vld [vmem:[%s1789_s3 + $0x30] sm:$0xf0]  ;;  %p1250_p1 = scmp.lt.s32.totalorder %s1248_s17, %s1244_s8 }
  0x3d   : > { %712 = vmatpush.bf16.msrb.mxu0 %v1038_v44  ;;  %v1121_v44 = vld [vmem:[%s1789_s3 + $0x28] sm:$0xf0]  ;;  %v910_v51 = vor.u32 %v1122_v48, %v909_v47  ;;  %p1246_p12 = pnand %p1245_p11, %p1360_p5 }
  0x3e   : > { %p1251_p2 = por %p1250_p1, %p1249_p0 }
  0x3f   : > { %725 = vmatpush.bf16.msrb.mxu1 %v1042_v63  ;;  %738 = vmatpush.bf16.msrb.mxu2 %v1046_v0  ;;  %p1247_p13 = pneg %p1246_p12 }
  0x40   : > { %751 = vmatpush.bf16.msrb.mxu3 %v1050_v3 }
  0x41   : > { %713 = vmatpush.bf16.msrb.mxu0 %v1010_v49  ;;  %v902_v49 = vor.u32 %v1121_v44, %v901_v43  ;;  %p1252_p3 = pnand %p1251_p2, %p1247_p13 }
  0x43   : > { %726 = vmatpush.bf16.msrb.mxu1 %v1014_v11  ;;  %739 = vmatpush.bf16.msrb.mxu2 %v1018_v12 }
  0x44   : > { %752 = vmatpush.bf16.msrb.mxu3 %v1022_v15 }
  0x45   : > { %714 = vmatpush.bf16.msrb.mxu0 %v982_v52  ;;  %v1213_v52 = vld [vmem:[%s1788_s2] ss:$0 sm:$0xff] }
  0x47   : > { %727 = vmatpush.bf16.msrb.mxu1 %v986_v19  ;;  %740 = vmatpush.bf16.msrb.mxu2 %v990_v23 }
  0x48   : > { %753 = vmatpush.bf16.msrb.mxu3 %v994_v24 }
  0x49   : > { %715 = vmatpush.bf16.msrb.mxu0 %v954_v55 }
  0x4b   : > { %728 = vmatpush.bf16.msrb.mxu1 %v958_v28  ;;  %741 = vmatpush.bf16.msrb.mxu2 %v962_v32 }
  0x4c   : > { %754 = vmatpush.bf16.msrb.mxu3 %v966_v33 }
  0x4d   : > { %716 = vmatpush.bf16.msrb.mxu0 %v926_v59  ;;  %v367_v59 = vld [vmem:[%s1790_s4] sm:$0x7f] }
  0x4e   : > { %v369_v60 = vperm.slane %v367_v59, 0  ;;  %v372_v61 = vperm.slane %v367_v59, 3  ;;  %v370_v2 = vperm.slane %v367_v59, 1  ;;  %v371_v3 = vperm.slane %v367_v59, 2 }
  0x4f   : > { %729 = vmatpush.bf16.msrb.mxu1 %v930_v40  ;;  %742 = vmatpush.bf16.msrb.mxu2 %v934_v41  ;;  %v373_v12 = vperm.slane %v367_v59, 4  ;;  %v374_v19 = vperm.slane %v367_v59, 5  ;;  %v375_v20 = vperm.slane %v367_v59, 6 }
  0x50   : > { %755 = vmatpush.bf16.msrb.mxu3 %v938_v42 }
  0x51   : > { %717 = vmatpush.bf16.msrb.mxu0 %v898_v7 }
  0x53   : > { %730 = vmatpush.bf16.msrb.mxu1 %v902_v49  ;;  %743 = vmatpush.bf16.msrb.mxu2 %v906_v50 }
  0x54   : > { %756 = vmatpush.bf16.msrb.mxu3 %v910_v51 }
  0xb1   : > { %v296_v53 = vpop.f32.mrf.mxu0 }
  0xb2   : > { %v297_v54 = vadd.f32 %v1213_v52, %v296_v53 }
  0xb4   : > { %v300_v55 = vmul.f32 0.2, %v297_v54 }
  0xb6   : > { %v301_v56 = vmax.f32 %v297_v54, %v300_v55 }
  0xb8   : > { %v302_v57 = vpack.c.bf16 %v301_v56, %v301_v56 }
  0xb9   : > { %v298_v58 = vpop.f32.mrf.mxu0 }
  0xba   : > { %679 = vmatmul.bf16.vlgmr.msra.gmra.mxu1 %v302_v57  ;;  %692 = vmatmul.bf16.vlgmr.msra.gmra.mxu2 %v302_v57 }
  0xbb   : > { %705 = vmatmul.bf16.vlgmr.msra.gmra.mxu3 %v302_v57  ;;  %718 = vmatmul.bf16.vlgmr.msrb.gmra.mxu0 %v302_v57 }
  0xca   : > { %731 = vmatmul.bf16.vlgmr.msrb.gmra.mxu1 %v302_v57  ;;  %744 = vmatmul.bf16.vlgmr.msrb.gmra.mxu2 %v302_v57 }
  0xcb   : > { %757 = vmatmul.bf16.vlgmr.msrb.gmra.mxu3 %v302_v57 }
 0x137   : > { %v680_v62 = vpop.f32.mrf.mxu1 }
 0x138   : > { %v681_v63 = vadd.f32 %v680_v62, %v369_v60  ;;  %v719_v0 = vpop.f32.mrf.mxu0 }
 0x139   : > { %v720_v1 = vadd.f32 %v719_v0, %v372_v61 }
 0x13a   : > { %1214 = vtanh.f32 %v681_v63 }
 0x13b   : > { %1216 = vtanh.f32 %v720_v1 }
 0x13d   : > { %v693_v4 = vpop.f32.mrf.mxu2 }
 0x13e   : > { %v694_v5 = vadd.f32 %v693_v4, %v370_v2  ;;  %v706_v6 = vpop.f32.mrf.mxu3 }
 0x13f   : > { %v707_v7 = vadd.f32 %v706_v6, %v371_v3  ;;  %v682_v8 = vpop.f32.mrf.mxu1 }
 0x140   : > { %v1215_v9 = vpop.eup %1214  ;;  %1218 = vtanh.f32 %v694_v5  ;;  %v721_v10 = vpop.f32.mrf.mxu0 }
 0x141   : > { %v1217_v11 = vpop.eup %1216  ;;  %769 = vst [vmem:[%s1743_s15] sm:$0xff] %v1215_v9  ;;  %1220 = vtanh.f32 %v707_v7 }
 0x142   : > { %772 = vst [vmem:[%s1743_s15 + $0x18] sm:$0xff] %v1217_v11 }
 0x145   : > { %v695_v13 = vpop.f32.mrf.mxu2 }
 0x146   : > { %v1219_v14 = vpop.eup %1218  ;;  %v708_v15 = vpop.f32.mrf.mxu3 }
 0x147   : > { %v1221_v16 = vpop.eup %1220  ;;  %770 = vst [vmem:[%s1743_s15 + $0x8] sm:$0xff] %v1219_v14  ;;  %v732_v17 = vpop.f32.mrf.mxu1 }
 0x148   : > { %771 = vst [vmem:[%s1743_s15 + $0x10] sm:$0xff] %v1221_v16  ;;  %v733_v18 = vadd.f32 %v732_v17, %v373_v12 }
 0x14a   : > { %1222 = vtanh.f32 %v733_v18 }
 0x14d   : > { %v745_v21 = vpop.f32.mrf.mxu2 }
 0x14e   : > { %v746_v22 = vadd.f32 %v745_v21, %v374_v19  ;;  %v758_v23 = vpop.f32.mrf.mxu3 }
 0x14f   : > { %v759_v24 = vadd.f32 %v758_v23, %v375_v20  ;;  %v734_v25 = vpop.f32.mrf.mxu1 }
 0x150   : > { %v1223_v26 = vpop.eup %1222  ;;  %1224 = vtanh.f32 %v746_v22 }
 0x151   : > { %773 = vst [vmem:[%s1743_s15 + $0x20] sm:$0xff] %v1223_v26  ;;  %1226 = vtanh.f32 %v759_v24 }
 0x155   : > { %v747_v27 = vpop.f32.mrf.mxu2 }
 0x156   : > { %v1225_v28 = vpop.eup %1224  ;;  %v760_v29 = vpop.f32.mrf.mxu3 }
 0x157   : > { %v1227_v30 = vpop.eup %1226  ;;  %774 = vst [vmem:[%s1743_s15 + $0x28] sm:$0xff] %v1225_v28 }
 0x158   : > { %776 = vst.msk [vmem:[%s1743_s15 + $0x30] sm:$0xff] %vm775_vm2, %v1227_v30 }
 0x159   : > { %1255 = shalt.err (!%p1252_p3)
}
 0x15a   : > { %1174 = dma.vmem_to_hbm [thread:$0]  (%p1360_p5), %s792_s6, 896, %s794_s7, %s778_s22  }
 0x15b PF: > { %p1180_p4 = scmp.ge.s32.totalorder %s1290_s21, 2  ;;  %s805_s12 = sand.u32 1, %s1278_s18  }
 0x15c   : > { %s806_s14 = scalar_lea.sflag [#allocation3], %s805_s12 }
 0x15d   : > { %p1177_p7 = pnand %p1180_p4, %p1364_p6 }
 0x15f   : > { %p1178_p8 = pneg %p1177_p7 }
 0x161   : > { %1273 = dma.done.wait (%p1178_p8), %s806_s14, 896  }
 0x162   : > { %1275 = vsyncadd (%p1178_p8), %s806_s14, 4294966400  ;;  %p15_p9 = scmp.ge.s32.totalorder %s1347_s24, 4   ;;  %s1794_s18 = smov %s1282_s19 }
 0x163   : > { %s1795_s19 = smov %s1286_s20  ;;  %s1796_s20 = smov %s1358_s27 }
 0x164   : > { %s1797_s21 = smov %s1347_s24  ;;  %17 = sbr.rel (!%p15_p9) target bundleno = 3 (0x3), region = 75 }
 0x169   :  { %812 = vsyncpa [#allocation3], 1 }
 0x16a   :  { %814 = vsyncpa [#allocation3 + $0x1], 1 }

</bundles_post_ra>
